<compile_context>
chip_gen: v5e
topology: v5e:2x2
jax: 0.10.0
libtpu: 0.0.40
codegen_flags: <defaults>
</compile_context>

<pallas_src>
import functools
from functools import partial

import numpy as np
import jax
import jax.numpy as jnp
from jax.experimental import pallas as pl
from jax.experimental.pallas import tpu as pltpu

BN_EPS = 1e-5


def _round_up(x, m):
    return ((x + m - 1) // m) * m


def _dqn_naf_kernel(action_dim, state_dim, in_lanes, layer_size, valid_b,
                    xin_ref, pslab_ref, mf_ref, out_ref):
    A = action_dim
    L = layer_size
    S = state_dim
    B = xin_ref.shape[0]
    po = in_lanes + 3 * L              # first bias / gamma / beta row in the slab
    mf = mf_ref[0]                     # runtime max_force (no recompiles per value)

    # Mask for padded batch rows (only materialized when the batch was padded).
    if valid_b == B:
        row_mask = None
    else:
        rows = jax.lax.broadcasted_iota(jnp.int32, (B, 1), 0)
        row_mask = (rows < valid_b).astype(jnp.float32)
    inv_n = 1.0 / float(valid_b)

    def dense_relu_bn(x, w, b, g, be):
        h = jnp.dot(x, w, preferred_element_type=jnp.float32) + b
        h = jnp.maximum(h, 0.0)                                   # relu
        if row_mask is None:
            s1 = jnp.sum(h, axis=0, keepdims=True)
            s2 = jnp.sum(h * h, axis=0, keepdims=True)
        else:
            hm = h * row_mask
            s1 = jnp.sum(hm, axis=0, keepdims=True)
            s2 = jnp.sum(hm * h, axis=0, keepdims=True)
        mean = s1 * inv_n                                         # BatchNorm1d (training mode)
        # One-pass E[h^2]-E[h]^2 (clamped); accurate to ~1e-2 tol, see review notes.
        var = jnp.maximum(s2 * inv_n - mean * mean, 0.0)          # biased variance
        scale = g * jax.lax.rsqrt(var + BN_EPS)                   # gamma folded into scale
        shift = be - mean * scale                                 # folded epilogue
        return h * scale + shift

    xin = xin_ref[...]                                            # [state | action | 0...]
    x = dense_relu_bn(xin, pslab_ref[0:in_lanes, :],
                      pslab_ref[po + 0:po + 1, :], pslab_ref[po + 1:po + 2, :],
                      pslab_ref[po + 2:po + 3, :])
    x = dense_relu_bn(x, pslab_ref[in_lanes:in_lanes + L, :],
                      pslab_ref[po + 3:po + 4, :], pslab_ref[po + 4:po + 5, :],
                      pslab_ref[po + 5:po + 6, :])
    x = dense_relu_bn(x, pslab_ref[in_lanes + L:in_lanes + 2 * L, :],
                      pslab_ref[po + 6:po + 7, :], pslab_ref[po + 7:po + 8, :],
                      pslab_ref[po + 8:po + 9, :])

    # Single fused head matmul; lanes [0:A]=mu, [A:2A]=diag(L) logits, [2A]=v.
    head = jnp.dot(x, pslab_ref[in_lanes + 2 * L:in_lanes + 3 * L, :],
                   preferred_element_type=jnp.float32) + pslab_ref[po + 9:po + 10, :]
    mu_raw = head[:, 0:A]
    ldiag_raw = head[:, A:2 * A]
    v = head[:, 2 * A:2 * A + 1]

    # mu = mu / ||mu|| * tanh(||mu||) * max_force; single rsqrt, norm = sumsq*rsqrt.
    # Zero-norm rows still produce NaN, matching PyTorch's 0/0.
    sumsq = jnp.sum(mu_raw * mu_raw, axis=-1, keepdims=True)
    r = jax.lax.rsqrt(sumsq)
    mu = mu_raw * (r * jnp.tanh(sumsq * r) * mf)

    # P = L * L^T (element-wise) == diag(exp(2 * tanh(diag logits)))
    p_diag = jnp.exp(2.0 * jnp.tanh(ldiag_raw))
    diff = xin[:, S:S + A] - mu                                   # action lives in lanes S:S+A
    a = -0.5 * jnp.sum(p_diag * diff * diff, axis=-1, keepdims=True)

    # Lane-dense (B_pad, 128) output; only lanes [0:A+2] are meaningful.
    out_ref[:, 0:A] = mu
    out_ref[:, A:A + 1] = a + v
    out_ref[:, A + 1:A + 2] = v


def init_params(key, state_dim, action_dim, layer_size):
    """Deterministic PyTorch-default-like init (U(-1/sqrt(fan_in), 1/sqrt(fan_in)))."""
    n_l = action_dim * (action_dim + 1) // 2

    def linear(key, fan_in, fan_out):
        kw, kb = jax.random.split(key)
        bound = 1.0 / jnp.sqrt(fan_in)
        w = jax.random.uniform(kw, (fan_in, fan_out), jnp.float32, -bound, bound)
        b = jax.random.uniform(kb, (1, fan_out), jnp.float32, -bound, bound)
        return w, b

    keys = jax.random.split(key, 6)
    p = {}
    p["w1"], p["b1"] = linear(keys[0], state_dim, layer_size)
    p["w2"], p["b2"] = linear(keys[1], layer_size, layer_size)
    p["w3"], p["b3"] = linear(keys[2], layer_size, layer_size)
    p["wmu"], p["bmu"] = linear(keys[3], layer_size, action_dim)
    p["wl"], p["bl"] = linear(keys[4], layer_size, n_l)
    p["wv"], p["bv"] = linear(keys[5], layer_size, 1)
    for i in (1, 2, 3):                       # BatchNorm affine: gamma=1, beta=0
        p[f"g{i}"] = jnp.ones((1, layer_size), jnp.float32)
        p[f"be{i}"] = jnp.zeros((1, layer_size), jnp.float32)
    return p


def prepare_params(params, state_dim, action_dim):
    """One-time packing of all 21 small parameter tensors into a single slab.

    Row layout of the returned (in_lanes + 3*L + 16, L) slab:
      [0 : in_lanes]        dense1 weight padded to in_lanes rows (rows >= state_dim
                            are zero so the action lanes of the input slab contribute 0)
      [in_lanes : +L]       dense2 weight
      [in_lanes+L : +L]     dense3 weight
      [in_lanes+2L : +L]    fused head weight (cols [0:A]=mu, [A:2A]=diag(L), [2A]=v)
      [in_lanes+3L : +10]   b1,g1,be1,b2,g2,be2,b3,g3,be3,bhead   (+6 zero pad rows)
    """
    L = params["w1"].shape[1]
    A = action_dim
    H = 2 * A + 1
    assert L >= H, "layer_size must be >= 2*action_dim + 1 for the fused head slab"
    in_lanes = _round_up(state_dim + A, 128)

    # Diagonal columns of the row-major tril packing (torch.tril_indices ordering).
    diag_idx = np.array([i * (i + 1) // 2 + i for i in range(A)], dtype=np.int32)
    wl_diag = params["wl"][:, diag_idx]
    bl_diag = params["bl"][:, diag_idx]

    w1_pad = jnp.zeros((in_lanes, L), jnp.float32).at[:state_dim, :].set(params["w1"])
    whead = jnp.pad(jnp.concatenate([params["wmu"], wl_diag, params["wv"]], axis=1),
                    ((0, 0), (0, L - H)))
    bhead = jnp.pad(jnp.concatenate([params["bmu"], bl_diag, params["bv"]], axis=1),
                    ((0, 0), (0, L - H)))
    brows = jnp.concatenate([params["b1"], params["g1"], params["be1"],
                             params["b2"], params["g2"], params["be2"],
                             params["b3"], params["g3"], params["be3"],
                             bhead], axis=0)                                    # (10, L)
    brows = jnp.pad(brows, ((0, 6), (0, 0)))                                    # -> 16 rows
    pslab = jnp.concatenate([w1_pad, params["w2"], params["w3"], whead, brows], axis=0)
    return jax.device_put(pslab)


@partial(jax.jit, static_argnames=("action_dim",))
def _forward_with_action(pslab, state, action, max_force, *, action_dim):
    B, state_dim = state.shape
    A = action_dim
    L = pslab.shape[1]
    in_lanes = pslab.shape[0] - 3 * L - 16
    out_lanes = 128
    assert state_dim + A <= in_lanes

    # Single fused activation slab [state | action | 0...], batch padded to sublanes.
    B_pad = _round_up(B, 8)
    xin = jnp.concatenate([state, action], axis=1)
    xin = jnp.pad(xin, ((0, B_pad - B), (0, in_lanes - state_dim - A)))
    mf = jnp.asarray(max_force, jnp.float32).reshape((1,))

    flops = 2 * B_pad * L * (in_lanes + 3 * L)
    transcendentals = 3 * L + B_pad * (2 + 2 * A)
    bytes_accessed = 4 * (B_pad * in_lanes + int(pslab.size) + 1 + B_pad * out_lanes)

    out = pl.pallas_call(
        partial(_dqn_naf_kernel, A, state_dim, in_lanes, L, B),
        out_shape=jax.ShapeDtypeStruct((B_pad, out_lanes), jnp.float32),
        in_specs=[pl.BlockSpec(memory_space=pltpu.MemorySpace.VMEM),
                  pl.BlockSpec(memory_space=pltpu.MemorySpace.VMEM),
                  pl.BlockSpec(memory_space=pltpu.MemorySpace.SMEM)],
        out_specs=pl.BlockSpec(memory_space=pltpu.MemorySpace.VMEM),
        cost_estimate=pl.CostEstimate(flops=flops,
                                      transcendentals=transcendentals,
                                      bytes_accessed=bytes_accessed),
    )(xin, pslab, mf)

    mu = out[:B, 0:A]
    q = out[:B, A:A + 1]
    v = out[:B, A + 1:A + 2]
    return mu, q, v


def dqn_naf_forward(pslab, state, action=None, *, action_dim, max_force):
    """Mirrors DQNNAF.forward(state, action) -> (mu, q, v); q is None if action is None."""
    if action is None:
        dummy = jnp.zeros((state.shape[0], action_dim), jnp.float32)
        mu, _, v = _forward_with_action(pslab, state, dummy, max_force,
                                        action_dim=action_dim)
        return mu, None, v
    return _forward_with_action(pslab, state, action, max_force, action_dim=action_dim)


def _reference(params, state, action, action_dim, max_force):
    """Pure-JAX reference of the PyTorch forward (training-mode BatchNorm)."""
    hp = jax.lax.Precision.HIGHEST

    def bn(h, g, be):
        mean = jnp.mean(h, axis=0, keepdims=True)
        var = jnp.mean((h - mean) ** 2, axis=0, keepdims=True)
        return (h - mean) / jnp.sqrt(var + BN_EPS) * g + be

    x = state
    for i in (1, 2, 3):
        x = jnp.maximum(jnp.dot(x, params[f"w{i}"], precision=hp) + params[f"b{i}"], 0.0)
        x = bn(x, params[f"g{i}"], params[f"be{i}"])
    mu = jnp.dot(x, params["wmu"], precision=hp) + params["bmu"]
    n = jnp.sqrt(jnp.sum(mu * mu, axis=-1, keepdims=True))
    mu = mu / n * jnp.tanh(n) * max_force
    l_entries = jnp.tanh(jnp.dot(x, params["wl"], precision=hp) + params["bl"])
    v = jnp.dot(x, params["wv"], precision=hp) + params["bv"]
    diag_idx = np.array([i * (i + 1) // 2 + i for i in range(action_dim)])
    p_diag = jnp.exp(2.0 * l_entries[:, diag_idx])
    diff = action - mu
    q = -0.5 * jnp.sum(p_diag * diff * diff, axis=-1, keepdims=True) + v
    return mu, q, v


if __name__ == "__main__":
    state_dim = 16
    action_dim = 3
    layer_size = 32
    max_force = 2.0

    key = jax.random.PRNGKey(0)
    k_params, k_data = jax.random.split(key)

    params = init_params(k_params, state_dim, action_dim, layer_size)
    pslab = prepare_params(params, state_dim, action_dim)      # one-time packing

    # batch=8 exercises the fast path; batch=5 exercises masked BN statistics.
    for batch in (8, 5):
        ks, ka = jax.random.split(jax.random.fold_in(k_data, batch))
        state = jax.random.normal(ks, (batch, state_dim), jnp.float32)
        action = jax.random.normal(ka, (batch, action_dim), jnp.float32)

        mu, q, v = dqn_naf_forward(pslab, state, action,
                                   action_dim=action_dim, max_force=max_force)
        jax.block_until_ready((mu, q, v))

        assert mu.shape == (batch, action_dim)
        assert q.shape == (batch, 1)
        assert v.shape == (batch, 1)

        mu_r, q_r, v_r = _reference(params, state, action, action_dim, max_force)
        np.testing.assert_allclose(np.asarray(mu), np.asarray(mu_r), rtol=1e-2, atol=1e-2)
        np.testing.assert_allclose(np.asarray(q), np.asarray(q_r), rtol=1e-2, atol=1e-2)
        np.testing.assert_allclose(np.asarray(v), np.asarray(v_r), rtol=1e-2, atol=1e-2)

    # action=None path (q is None, mu/v still computed).
    mu, q, v = dqn_naf_forward(pslab, state, None,
                               action_dim=action_dim, max_force=max_force)
    jax.block_until_ready((mu, v))
    assert q is None

    print("KERNEL_OK")
</pallas_src>

<mosaic_0001>
module attributes {stable_mosaic.version = 11 : i64} {
  func.func @_dqn_naf_kernel(%arg0: memref<8x128xf32, #tpu.memory_space<vmem>>, %arg1: memref<240x32xf32, #tpu.memory_space<vmem>>, %arg2: memref<1xf32, #tpu.memory_space<smem>>, %arg3: memref<8x128xf32, #tpu.memory_space<vmem>>) attributes {dimension_semantics = [], scalar_prefetch = 0 : i64, scratch_operands = 0 : i64, tpu.core_type = #tpu.core_type<tc>} {
    %c0 = arith.constant 0 : index
    %0 = memref.load %arg2[%c0] : memref<1xf32, #tpu.memory_space<smem>>
    %c0_0 = arith.constant 0 : index
    %c0_1 = arith.constant 0 : index
    %1 = vector.load %arg0[%c0_0, %c0_1] : memref<8x128xf32, #tpu.memory_space<vmem>>, vector<8x128xf32>
    %c0_2 = arith.constant 0 : index
    %c0_3 = arith.constant 0 : index
    %2 = vector.load %arg1[%c0_2, %c0_3] : memref<240x32xf32, #tpu.memory_space<vmem>>, vector<128x32xf32>
    %c224 = arith.constant 224 : index
    %c0_4 = arith.constant 0 : index
    %3 = vector.load %arg1[%c224, %c0_4] : memref<240x32xf32, #tpu.memory_space<vmem>>, vector<1x32xf32>
    %c225 = arith.constant 225 : index
    %c0_5 = arith.constant 0 : index
    %4 = vector.load %arg1[%c225, %c0_5] : memref<240x32xf32, #tpu.memory_space<vmem>>, vector<1x32xf32>
    %c226 = arith.constant 226 : index
    %c0_6 = arith.constant 0 : index
    %5 = vector.load %arg1[%c226, %c0_6] : memref<240x32xf32, #tpu.memory_space<vmem>>, vector<1x32xf32>
    %cst = arith.constant dense<0.000000e+00> : vector<8x32xf32>
    %6 = tpu.matmul %1, %2, %cst {dimension_numbers = #tpu.dot_dimension_numbers<[1], [0], [0], [1], [0, 0, 1, 1], [], []>} : vector<8x128xf32>, vector<128x32xf32>, vector<8x32xf32> -> vector<8x32xf32>
    %7 = vector.broadcast %3 : vector<1x32xf32> to vector<8x32xf32>
    %8 = arith.addf %6, %7 : vector<8x32xf32>
    %cst_7 = arith.constant 0.000000e+00 : f32
    %9 = vector.broadcast %cst_7 : f32 to vector<8x32xf32>
    %10 = arith.maximumf %8, %9 : vector<8x32xf32>
    %cst_8 = arith.constant dense<0.000000e+00> : vector<32xf32>
    %11 = vector.multi_reduction <add>, %10, %cst_8 [0] : vector<8x32xf32> to vector<32xf32>
    %12 = vector.shape_cast %11 : vector<32xf32> to vector<1x32xf32>
    %13 = arith.mulf %10, %10 : vector<8x32xf32>
    %cst_9 = arith.constant dense<0.000000e+00> : vector<32xf32>
    %14 = vector.multi_reduction <add>, %13, %cst_9 [0] : vector<8x32xf32> to vector<32xf32>
    %15 = vector.shape_cast %14 : vector<32xf32> to vector<1x32xf32>
    %cst_10 = arith.constant 1.250000e-01 : f32
    %16 = vector.broadcast %cst_10 : f32 to vector<1x32xf32>
    %17 = arith.mulf %12, %16 : vector<1x32xf32>
    %cst_11 = arith.constant 1.250000e-01 : f32
    %18 = vector.broadcast %cst_11 : f32 to vector<1x32xf32>
    %19 = arith.mulf %15, %18 : vector<1x32xf32>
    %20 = arith.mulf %17, %17 : vector<1x32xf32>
    %21 = arith.subf %19, %20 : vector<1x32xf32>
    %cst_12 = arith.constant 0.000000e+00 : f32
    %22 = vector.broadcast %cst_12 : f32 to vector<1x32xf32>
    %23 = arith.maximumf %21, %22 : vector<1x32xf32>
    %cst_13 = arith.constant 9.99999974E-6 : f32
    %24 = vector.broadcast %cst_13 : f32 to vector<1x32xf32>
    %25 = arith.addf %23, %24 : vector<1x32xf32>
    %26 = math.rsqrt %25 : vector<1x32xf32>
    %27 = arith.mulf %4, %26 : vector<1x32xf32>
    %28 = arith.mulf %17, %27 : vector<1x32xf32>
    %29 = arith.subf %5, %28 : vector<1x32xf32>
    %30 = vector.broadcast %27 : vector<1x32xf32> to vector<8x32xf32>
    %31 = arith.mulf %10, %30 : vector<8x32xf32>
    %32 = vector.broadcast %29 : vector<1x32xf32> to vector<8x32xf32>
    %33 = arith.addf %31, %32 : vector<8x32xf32>
    %c128 = arith.constant 128 : index
    %c0_14 = arith.constant 0 : index
    %34 = vector.load %arg1[%c128, %c0_14] : memref<240x32xf32, #tpu.memory_space<vmem>>, vector<32x32xf32>
    %c227 = arith.constant 227 : index
    %c0_15 = arith.constant 0 : index
    %35 = vector.load %arg1[%c227, %c0_15] : memref<240x32xf32, #tpu.memory_space<vmem>>, vector<1x32xf32>
    %c228 = arith.constant 228 : index
    %c0_16 = arith.constant 0 : index
    %36 = vector.load %arg1[%c228, %c0_16] : memref<240x32xf32, #tpu.memory_space<vmem>>, vector<1x32xf32>
    %c229 = arith.constant 229 : index
    %c0_17 = arith.constant 0 : index
    %37 = vector.load %arg1[%c229, %c0_17] : memref<240x32xf32, #tpu.memory_space<vmem>>, vector<1x32xf32>
    %cst_18 = arith.constant dense<0.000000e+00> : vector<8x32xf32>
    %38 = tpu.matmul %33, %34, %cst_18 {dimension_numbers = #tpu.dot_dimension_numbers<[1], [0], [0], [1], [0, 0, 1, 1], [], []>} : vector<8x32xf32>, vector<32x32xf32>, vector<8x32xf32> -> vector<8x32xf32>
    %39 = vector.broadcast %35 : vector<1x32xf32> to vector<8x32xf32>
    %40 = arith.addf %38, %39 : vector<8x32xf32>
    %cst_19 = arith.constant 0.000000e+00 : f32
    %41 = vector.broadcast %cst_19 : f32 to vector<8x32xf32>
    %42 = arith.maximumf %40, %41 : vector<8x32xf32>
    %cst_20 = arith.constant dense<0.000000e+00> : vector<32xf32>
    %43 = vector.multi_reduction <add>, %42, %cst_20 [0] : vector<8x32xf32> to vector<32xf32>
    %44 = vector.shape_cast %43 : vector<32xf32> to vector<1x32xf32>
    %45 = arith.mulf %42, %42 : vector<8x32xf32>
    %cst_21 = arith.constant dense<0.000000e+00> : vector<32xf32>
    %46 = vector.multi_reduction <add>, %45, %cst_21 [0] : vector<8x32xf32> to vector<32xf32>
    %47 = vector.shape_cast %46 : vector<32xf32> to vector<1x32xf32>
    %cst_22 = arith.constant 1.250000e-01 : f32
    %48 = vector.broadcast %cst_22 : f32 to vector<1x32xf32>
    %49 = arith.mulf %44, %48 : vector<1x32xf32>
    %cst_23 = arith.constant 1.250000e-01 : f32
    %50 = vector.broadcast %cst_23 : f32 to vector<1x32xf32>
    %51 = arith.mulf %47, %50 : vector<1x32xf32>
    %52 = arith.mulf %49, %49 : vector<1x32xf32>
    %53 = arith.subf %51, %52 : vector<1x32xf32>
    %cst_24 = arith.constant 0.000000e+00 : f32
    %54 = vector.broadcast %cst_24 : f32 to vector<1x32xf32>
    %55 = arith.maximumf %53, %54 : vector<1x32xf32>
    %cst_25 = arith.constant 9.99999974E-6 : f32
    %56 = vector.broadcast %cst_25 : f32 to vector<1x32xf32>
    %57 = arith.addf %55, %56 : vector<1x32xf32>
    %58 = math.rsqrt %57 : vector<1x32xf32>
    %59 = arith.mulf %36, %58 : vector<1x32xf32>
    %60 = arith.mulf %49, %59 : vector<1x32xf32>
    %61 = arith.subf %37, %60 : vector<1x32xf32>
    %62 = vector.broadcast %59 : vector<1x32xf32> to vector<8x32xf32>
    %63 = arith.mulf %42, %62 : vector<8x32xf32>
    %64 = vector.broadcast %61 : vector<1x32xf32> to vector<8x32xf32>
    %65 = arith.addf %63, %64 : vector<8x32xf32>
    %c160 = arith.constant 160 : index
    %c0_26 = arith.constant 0 : index
    %66 = vector.load %arg1[%c160, %c0_26] : memref<240x32xf32, #tpu.memory_space<vmem>>, vector<32x32xf32>
    %c230 = arith.constant 230 : index
    %c0_27 = arith.constant 0 : index
    %67 = vector.load %arg1[%c230, %c0_27] : memref<240x32xf32, #tpu.memory_space<vmem>>, vector<1x32xf32>
    %c231 = arith.constant 231 : index
    %c0_28 = arith.constant 0 : index
    %68 = vector.load %arg1[%c231, %c0_28] : memref<240x32xf32, #tpu.memory_space<vmem>>, vector<1x32xf32>
    %c232 = arith.constant 232 : index
    %c0_29 = arith.constant 0 : index
    %69 = vector.load %arg1[%c232, %c0_29] : memref<240x32xf32, #tpu.memory_space<vmem>>, vector<1x32xf32>
    %cst_30 = arith.constant dense<0.000000e+00> : vector<8x32xf32>
    %70 = tpu.matmul %65, %66, %cst_30 {dimension_numbers = #tpu.dot_dimension_numbers<[1], [0], [0], [1], [0, 0, 1, 1], [], []>} : vector<8x32xf32>, vector<32x32xf32>, vector<8x32xf32> -> vector<8x32xf32>
    %71 = vector.broadcast %67 : vector<1x32xf32> to vector<8x32xf32>
    %72 = arith.addf %70, %71 : vector<8x32xf32>
    %cst_31 = arith.constant 0.000000e+00 : f32
    %73 = vector.broadcast %cst_31 : f32 to vector<8x32xf32>
    %74 = arith.maximumf %72, %73 : vector<8x32xf32>
    %cst_32 = arith.constant dense<0.000000e+00> : vector<32xf32>
    %75 = vector.multi_reduction <add>, %74, %cst_32 [0] : vector<8x32xf32> to vector<32xf32>
    %76 = vector.shape_cast %75 : vector<32xf32> to vector<1x32xf32>
    %77 = arith.mulf %74, %74 : vector<8x32xf32>
    %cst_33 = arith.constant dense<0.000000e+00> : vector<32xf32>
    %78 = vector.multi_reduction <add>, %77, %cst_33 [0] : vector<8x32xf32> to vector<32xf32>
    %79 = vector.shape_cast %78 : vector<32xf32> to vector<1x32xf32>
    %cst_34 = arith.constant 1.250000e-01 : f32
    %80 = vector.broadcast %cst_34 : f32 to vector<1x32xf32>
    %81 = arith.mulf %76, %80 : vector<1x32xf32>
    %cst_35 = arith.constant 1.250000e-01 : f32
    %82 = vector.broadcast %cst_35 : f32 to vector<1x32xf32>
    %83 = arith.mulf %79, %82 : vector<1x32xf32>
    %84 = arith.mulf %81, %81 : vector<1x32xf32>
    %85 = arith.subf %83, %84 : vector<1x32xf32>
    %cst_36 = arith.constant 0.000000e+00 : f32
    %86 = vector.broadcast %cst_36 : f32 to vector<1x32xf32>
    %87 = arith.maximumf %85, %86 : vector<1x32xf32>
    %cst_37 = arith.constant 9.99999974E-6 : f32
    %88 = vector.broadcast %cst_37 : f32 to vector<1x32xf32>
    %89 = arith.addf %87, %88 : vector<1x32xf32>
    %90 = math.rsqrt %89 : vector<1x32xf32>
    %91 = arith.mulf %68, %90 : vector<1x32xf32>
    %92 = arith.mulf %81, %91 : vector<1x32xf32>
    %93 = arith.subf %69, %92 : vector<1x32xf32>
    %94 = vector.broadcast %91 : vector<1x32xf32> to vector<8x32xf32>
    %95 = arith.mulf %74, %94 : vector<8x32xf32>
    %96 = vector.broadcast %93 : vector<1x32xf32> to vector<8x32xf32>
    %97 = arith.addf %95, %96 : vector<8x32xf32>
    %c192 = arith.constant 192 : index
    %c0_38 = arith.constant 0 : index
    %98 = vector.load %arg1[%c192, %c0_38] : memref<240x32xf32, #tpu.memory_space<vmem>>, vector<32x32xf32>
    %cst_39 = arith.constant dense<0.000000e+00> : vector<8x32xf32>
    %99 = tpu.matmul %97, %98, %cst_39 {dimension_numbers = #tpu.dot_dimension_numbers<[1], [0], [0], [1], [0, 0, 1, 1], [], []>} : vector<8x32xf32>, vector<32x32xf32>, vector<8x32xf32> -> vector<8x32xf32>
    %c233 = arith.constant 233 : index
    %c0_40 = arith.constant 0 : index
    %100 = vector.load %arg1[%c233, %c0_40] : memref<240x32xf32, #tpu.memory_space<vmem>>, vector<1x32xf32>
    %101 = vector.broadcast %100 : vector<1x32xf32> to vector<8x32xf32>
    %102 = arith.addf %99, %101 : vector<8x32xf32>
    %103 = vector.extract_strided_slice %102 {offsets = [0, 0], sizes = [8, 3], strides = [1, 1]} : vector<8x32xf32> to vector<8x3xf32>
    %104 = vector.extract_strided_slice %102 {offsets = [0, 3], sizes = [8, 3], strides = [1, 1]} : vector<8x32xf32> to vector<8x3xf32>
    %105 = vector.extract_strided_slice %102 {offsets = [0, 6], sizes = [8, 1], strides = [1, 1]} : vector<8x32xf32> to vector<8x1xf32>
    %106 = arith.mulf %103, %103 : vector<8x3xf32>
    %cst_41 = arith.constant dense<0.000000e+00> : vector<8xf32>
    %107 = vector.multi_reduction <add>, %106, %cst_41 [1] : vector<8x3xf32> to vector<8xf32>
    %108 = vector.shape_cast %107 : vector<8xf32> to vector<8x1xf32>
    %109 = math.rsqrt %108 : vector<8x1xf32>
    %110 = arith.mulf %108, %109 : vector<8x1xf32>
    %111 = math.tanh %110 : vector<8x1xf32>
    %112 = arith.mulf %109, %111 : vector<8x1xf32>
    %113 = vector.broadcast %0 : f32 to vector<8x1xf32>
    %114 = arith.mulf %112, %113 : vector<8x1xf32>
    %115 = vector.broadcast %114 : vector<8x1xf32> to vector<8x3xf32>
    %116 = arith.mulf %103, %115 : vector<8x3xf32>
    %117 = math.tanh %104 : vector<8x3xf32>
    %cst_42 = arith.constant 2.000000e+00 : f32
    %118 = vector.broadcast %cst_42 : f32 to vector<8x3xf32>
    %119 = arith.mulf %118, %117 : vector<8x3xf32>
    %120 = math.exp %119 : vector<8x3xf32>
    %121 = vector.extract_strided_slice %1 {offsets = [0, 16], sizes = [8, 3], strides = [1, 1]} : vector<8x128xf32> to vector<8x3xf32>
    %122 = arith.subf %121, %116 : vector<8x3xf32>
    %123 = arith.mulf %120, %122 : vector<8x3xf32>
    %124 = arith.mulf %123, %122 : vector<8x3xf32>
    %cst_43 = arith.constant dense<0.000000e+00> : vector<8xf32>
    %125 = vector.multi_reduction <add>, %124, %cst_43 [1] : vector<8x3xf32> to vector<8xf32>
    %126 = vector.shape_cast %125 : vector<8xf32> to vector<8x1xf32>
    %cst_44 = arith.constant -5.000000e-01 : f32
    %127 = vector.broadcast %cst_44 : f32 to vector<8x1xf32>
    %128 = arith.mulf %127, %126 : vector<8x1xf32>
    %c0_45 = arith.constant 0 : index
    %c0_46 = arith.constant 0 : index
    %129 = vector.load %arg3[%c0_45, %c0_46] : memref<8x128xf32, #tpu.memory_space<vmem>>, vector<8x3xf32>
    tpu.vector_store %arg3[%c0_45, %c0_46], %116 {strides = array<i32>} : memref<8x128xf32, #tpu.memory_space<vmem>>, vector<8x3xf32>,
    %130 = arith.addf %128, %105 : vector<8x1xf32>
    %c0_47 = arith.constant 0 : index
    %c3 = arith.constant 3 : index
    %131 = vector.load %arg3[%c0_47, %c3] : memref<8x128xf32, #tpu.memory_space<vmem>>, vector<8x1xf32>
    tpu.vector_store %arg3[%c0_47, %c3], %130 {strides = array<i32>} : memref<8x128xf32, #tpu.memory_space<vmem>>, vector<8x1xf32>,
    %c0_48 = arith.constant 0 : index
    %c4 = arith.constant 4 : index
    %132 = vector.load %arg3[%c0_48, %c4] : memref<8x128xf32, #tpu.memory_space<vmem>>, vector<8x1xf32>
    tpu.vector_store %arg3[%c0_48, %c4], %105 {strides = array<i32>} : memref<8x128xf32, #tpu.memory_space<vmem>>, vector<8x1xf32>,
    return
  }
}

</mosaic_0001>

<bundles_post_ra>
// kernel: _forward_with_action.1
= control target key start
LH: loop header
LB: loop body
LE: loop exit
PB: predicated region body
PF: predicated region fallthrough
CT: control target
= control target key end

     0   :  { %vm58_vm0 = vcmask 261120   ;;  %vm267_vm10 = vcmask 23552   ;;  %s353_s8 = smov 16   ;;  %s354_s11 = smov 115   ;;  %vm316_vm14 = vcmask 31768   ;;  %vm322_vm15 = vcmask 39968   ;;  %s522_s1 = inlined_call_operand.vmem [shape: f32[240,32], index: 1, kind: input, shape index: {}]   ;;  %s523_s0 = inlined_call_operand.vmem [shape: f32[8,128], index: 0, kind: input, shape index: {}]   ;;  %s524_s2 = inlined_call_operand.<no memory space> [shape: f32[1], index: 2, kind: input, shape index: {}]   ;;  %s525_s3 = inlined_call_operand.vmem [shape: f32[8,128], index: 3, kind: output, shape index: {}]  }
   0x1   :  { %v32_v0 = vld [vmem:[%s522_s1 + $0x78] sm:$0xff]  ;;  %v31_v1 = vld [vmem:[%s522_s1 + $0x70] sm:$0xff]  ;;  %v30_v2 = vld [vmem:[%s522_s1 + $0x68] sm:$0xff]  ;;  %s356_s12 = smov 126  }
   0x2   :  { %37 = vmatpush.msra.mxu0 %v32_v0  ;;  %v29_v3 = vld [vmem:[%s522_s1 + $0x60] sm:$0xff]  ;;  %v28_v4 = vld [vmem:[%s522_s1 + $0x58] sm:$0xff]  ;;  %v27_v5 = vld [vmem:[%s522_s1 + $0x50] sm:$0xff] }
   0x3   :  { %v26_v6 = vld [vmem:[%s522_s1 + $0x48] sm:$0xff]  ;;  %v25_v7 = vld [vmem:[%s522_s1 + $0x40] sm:$0xff]  ;;  %v24_v8 = vld [vmem:[%s522_s1 + $0x38] sm:$0xff] }
   0x4   :  { %38 = vmatpush.msra.mxu0 %v31_v1  ;;  %v23_v9 = vld [vmem:[%s522_s1 + $0x30] sm:$0xff]  ;;  %v22_v10 = vld [vmem:[%s522_s1 + $0x28] sm:$0xff]  ;;  %v21_v11 = vld [vmem:[%s522_s1 + $0x20] sm:$0xff] }
   0x5   :  { %v20_v12 = vld [vmem:[%s522_s1 + $0x18] sm:$0xff]  ;;  %v19_v13 = vld [vmem:[%s522_s1 + $0x10] sm:$0xff]  ;;  %v18_v14 = vld [vmem:[%s522_s1 + $0x8] sm:$0xff] }
   0x6   :  { %39 = vmatpush.msra.mxu0 %v30_v2  ;;  %v17_v15 = vld [vmem:[%s522_s1] sm:$0xff]  ;;  %v100_v35 = vld [vmem:[%s522_s1 + $0x98] sm:$0xff]  ;;  %v99_v38 = vld [vmem:[%s522_s1 + $0x90] sm:$0xff] }
   0x7   :  { %v428_v16 = vld [vmem:[%s523_s0] sm:$0xff]  ;;  %120 = vmatpush.msra.mxu1 %v100_v35  ;;  %v98_v39 = vld [vmem:[%s522_s1 + $0x88] sm:$0xff] }
   0x8   :  { %40 = vmatpush.msra.mxu0 %v29_v3  ;;  %v335_v17 = vld [vmem:[%s522_s1 + $0xe0] ss:$0 sm:$0xff]  ;;  %v34_v51 = vld [vmem:[%s522_s1 + $0xe1] sm:$0x1]  ;;  %v35_v55 = vld [vmem:[%s522_s1 + $0xe2] sm:$0x1] }
   0x9   :  { %121 = vmatpush.msra.mxu1 %v99_v38  ;;  %v97_v42 = vld [vmem:[%s522_s1 + $0x80] sm:$0xff] }
   0xa   :  { %41 = vmatpush.msra.mxu0 %v28_v4  ;;  %v336_v62 = vld [vmem:[%s522_s1 + $0xe3] ss:$0 sm:$0xff] }
   0xb   :  { %122 = vmatpush.msra.mxu1 %v98_v39 }
   0xc   :  { %42 = vmatpush.msra.mxu0 %v27_v5 }
   0xd   :  { %123 = vmatpush.msra.mxu1 %v97_v42 }
   0xe   :  { %43 = vmatpush.msra.mxu0 %v26_v6 }
  0x10   :  { %44 = vmatpush.msra.mxu0 %v25_v7 }
  0x12   :  { %45 = vmatpush.msra.mxu0 %v24_v8 }
  0x14   :  { %46 = vmatpush.msra.mxu0 %v23_v9 }
  0x16   :  { %47 = vmatpush.msra.mxu0 %v22_v10 }
  0x18   :  { %48 = vmatpush.msra.mxu0 %v21_v11 }
  0x1a   :  { %49 = vmatpush.msra.mxu0 %v20_v12 }
  0x1c   :  { %50 = vmatpush.msra.mxu0 %v19_v13 }
  0x1e   :  { %51 = vmatpush.msra.mxu0 %v18_v14 }
  0x20   :  { %52 = vmatpush.msra.mxu0 %v17_v15 }
  0x21   :  { %53 = vmatmul.f32.vlgmr.msra.gmra.mxu0 %v428_v16 }
  0x9e   :  { %v54_v18 = vpop.f32.mrf.mxu0 }
  0x9f   :  { %v55_v19 = vadd.f32 %v335_v17, %v54_v18  ;;  %v170_v17 = vld [vmem:[%s522_s1 + $0xb8] sm:$0xff] }
  0xa0   :  { %190 = vmatpush.msra.mxu2 %v170_v17 }
  0xa1   :  { %v57_v20 = vmax.f32 %v55_v19, 0.0 }
  0xa3   :  { %v59_v21 = vsel %vm58_vm0, %v57_v20, 0.0  ;;  %v66_v22 = vmul.f32 %v57_v20, %v57_v20 }
  0xa4   :  { %v60_v23 = vrot.slane %v59_v21, 4 }
  0xa5   :  { %v67_v24 = vsel %vm58_vm0, %v66_v22, 0.0 }
  0xa6   :  { %v61_v25 = vadd.f32 %v60_v23, %v59_v21  ;;  %v68_v26 = vrot.slane %v67_v24, 4  ;;  %v168_v21 = vld [vmem:[%s522_s1 + $0xa8] sm:$0xff] }
  0xa8   :  { %v62_v27 = vrot.slane %v61_v25, 2  ;;  %v69_v28 = vadd.f32 %v68_v26, %v67_v24  ;;  %v167_v24 = vld [vmem:[%s522_s1 + $0xa0] sm:$0xff] }
  0xaa   :  { %v63_v29 = vadd.f32 %v62_v27, %v61_v25  ;;  %v70_v30 = vrot.slane %v69_v28, 2 }
  0xac   :  { %v64_v31 = vrot.slane %v63_v29, 1  ;;  %v71_v32 = vadd.f32 %v70_v30, %v69_v28 }
  0xae   :  { %v65_v33 = vadd.f32 %v64_v31, %v63_v29  ;;  %v72_v34 = vrot.slane %v71_v32, 1 }
  0xb0   :  { %v73_v36 = vadd.f32 %v72_v34, %v71_v32  ;;  %v74_v37 = vmul.f32 0.125, %v65_v33  ;;  %v102_v33 = vld [vmem:[%s522_s1 + $0xe4] sm:$0x1] }
  0xb2   :  { %v75_v40 = vmul.f32 0.125, %v73_v36  ;;  %v76_v41 = vmul.f32 %v74_v37, %v74_v37 }
  0xb4   :  { %v77_v43 = vsub.f32 %v75_v40, %v76_v41 }
  0xb6   :  { %v78_v44 = vmax.f32 %v77_v43, 0.0 }
  0xb8   :  { %v79_v45 = vadd.f32 1e-05, %v78_v44  ;;  %v337_v44 = vld [vmem:[%s522_s1 + $0xe6] ss:$0 sm:$0xff] }
  0xba   :  { %339 = vrsqrt.f32 %v79_v45  ;;  %vm86_vm2 = vweird.f32 %v79_v45 }
  0xc0   :  { %v340_v46 = vpop.eup %339 }
  0xc1   :  { %v81_v47 = vmul.f32 %v340_v46, %v79_v45  ;;  %vm87_vm1 = vweird.f32 %v340_v46 }
  0xc2   :  { %vm88_vm3 = vmor %vm86_vm2, %vm87_vm1 }
  0xc3   :  { %v82_v48 = vmul.f32 %v340_v46, %v81_v47 }
  0xc5   :  { %v83_v49 = vmul.f32 0.5, %v82_v48 }
  0xc7   :  { %v84_v50 = vsub.f32 1.5, %v83_v49 }
  0xc9   :  { %v85_v52 = vmul.f32 %v340_v46, %v84_v50 }
  0xcb   :  { %v89_v53 = vsel %vm88_vm3, %v340_v46, %v85_v52 }
  0xcc   :  { %v90_v54 = vmul.f32 %v89_v53, %v34_v51 }
  0xce   :  { %v93_v56 = vperm.slane %v90_v54, 0  ;;  %v91_v57 = vmul.f32 %v90_v54, %v74_v37  ;;  %v103_v37 = vld [vmem:[%s522_s1 + $0xe5] sm:$0x1] }
  0xd0   :  { %v92_v58 = vsub.f32 %v35_v55, %v91_v57  ;;  %v94_v59 = vmul.f32 %v93_v56, %v57_v20  ;;  %v169_v20 = vld [vmem:[%s522_s1 + $0xb0] sm:$0xff] }
  0xd1   :  { %191 = vmatpush.msra.mxu2 %v169_v20 }
  0xd2   :  { %v95_v60 = vperm.slane %v92_v58, 0 }
  0xd3   :  { %192 = vmatpush.msra.mxu2 %v168_v21 }
  0xd4   :  { %v96_v61 = vadd.f32 %v95_v60, %v94_v59 }
  0xd5   :  { %193 = vmatpush.msra.mxu2 %v167_v24 }
  0xd6   :  { %328 = vmatmul.msk.f32.vlgmr.msra.gmra.mxu1 %vm58_vm0, %v96_v61 }
 0x153   :  { %v125_v63 = vpop.f32.mrf.mxu1 }
 0x154   :  { %v126_v0 = vadd.f32 %v336_v62, %v125_v63  ;;  %v240_v62 = vld [vmem:[%s522_s1 + $0xd8] sm:$0xff] }
 0x155   :  { %258 = vmatpush.msra.mxu3 %v240_v62 }
 0x156   :  { %v128_v1 = vmax.f32 %v126_v0, 0.0 }
 0x158   :  { %v129_v2 = vsel %vm58_vm0, %v128_v1, 0.0  ;;  %v136_v3 = vmul.f32 %v128_v1, %v128_v1 }
 0x159   :  { %v130_v4 = vrot.slane %v129_v2, 4 }
 0x15a   :  { %v137_v5 = vsel %vm58_vm0, %v136_v3, 0.0 }
 0x15b   :  { %v131_v6 = vadd.f32 %v130_v4, %v129_v2  ;;  %v138_v7 = vrot.slane %v137_v5, 4  ;;  %v238_v2 = vld [vmem:[%s522_s1 + $0xc8] sm:$0xff] }
 0x15d   :  { %v132_v8 = vrot.slane %v131_v6, 2  ;;  %v139_v9 = vadd.f32 %v138_v7, %v137_v5  ;;  %v237_v5 = vld [vmem:[%s522_s1 + $0xc0] sm:$0xff] }
 0x15f   :  { %v133_v10 = vadd.f32 %v132_v8, %v131_v6  ;;  %v140_v11 = vrot.slane %v139_v9, 2 }
 0x161   :  { %v134_v12 = vrot.slane %v133_v10, 1  ;;  %v141_v13 = vadd.f32 %v140_v11, %v139_v9 }
 0x163   :  { %v135_v14 = vadd.f32 %v134_v12, %v133_v10  ;;  %v142_v15 = vrot.slane %v141_v13, 1 }
 0x165   :  { %v143_v18 = vadd.f32 %v142_v15, %v141_v13  ;;  %v144_v19 = vmul.f32 0.125, %v135_v14  ;;  %v172_v14 = vld [vmem:[%s522_s1 + $0xe7] sm:$0x1] }
 0x167   :  { %v145_v22 = vmul.f32 0.125, %v143_v18  ;;  %v146_v23 = vmul.f32 %v144_v19, %v144_v19 }
 0x169   :  { %v147_v25 = vsub.f32 %v145_v22, %v146_v23 }
 0x16b   :  { %v148_v26 = vmax.f32 %v147_v25, 0.0 }
 0x16d   :  { %v149_v27 = vadd.f32 1e-05, %v148_v26  ;;  %v338_v26 = vld [vmem:[%s522_s1 + $0xe9] ss:$0 sm:$0xff] }
 0x16f   :  { %341 = vrsqrt.f32 %v149_v27  ;;  %vm156_vm5 = vweird.f32 %v149_v27 }
 0x175   :  { %v342_v28 = vpop.eup %341 }
 0x176   :  { %v151_v29 = vmul.f32 %v342_v28, %v149_v27  ;;  %vm157_vm4 = vweird.f32 %v342_v28 }
 0x177   :  { %vm158_vm6 = vmor %vm156_vm5, %vm157_vm4 }
 0x178   :  { %v152_v30 = vmul.f32 %v342_v28, %v151_v29 }
 0x17a   :  { %v153_v31 = vmul.f32 0.5, %v152_v30 }
 0x17c   :  { %v154_v32 = vsub.f32 1.5, %v153_v31 }
 0x17e   :  { %v155_v34 = vmul.f32 %v342_v28, %v154_v32 }
 0x180   :  { %v159_v35 = vsel %vm158_vm6, %v342_v28, %v155_v34 }
 0x181   :  { %v160_v36 = vmul.f32 %v159_v35, %v102_v33 }
 0x183   :  { %v163_v38 = vperm.slane %v160_v36, 0  ;;  %v161_v39 = vmul.f32 %v160_v36, %v144_v19  ;;  %v173_v19 = vld [vmem:[%s522_s1 + $0xe8] sm:$0x1] }
 0x185   :  { %v162_v40 = vsub.f32 %v103_v37, %v161_v39  ;;  %v164_v41 = vmul.f32 %v163_v38, %v128_v1  ;;  %v239_v1 = vld [vmem:[%s522_s1 + $0xd0] sm:$0xff] }
 0x186   :  { %259 = vmatpush.msra.mxu3 %v239_v1 }
 0x187   :  { %v165_v42 = vperm.slane %v162_v40, 0 }
 0x188   :  { %260 = vmatpush.msra.mxu3 %v238_v2 }
 0x189   :  { %v166_v43 = vadd.f32 %v165_v42, %v164_v41  ;;  %v284_v41 = vstv %s524_s2  ;;  %s355_s2 = smov 125  }
 0x18a   :  { %261 = vmatpush.msra.mxu3 %v237_v5 }
 0x18b   :  { %329 = vmatmul.msk.f32.vlgmr.msra.gmra.mxu2 %vm58_vm0, %v166_v43 }
 0x20e   :  { %v195_v45 = vpop.f32.mrf.mxu2 }
 0x20f   :  { %v196_v46 = vadd.f32 %v337_v44, %v195_v45 }
 0x211   :  { %v198_v47 = vmax.f32 %v196_v46, 0.0 }
 0x213   :  { %v199_v48 = vsel %vm58_vm0, %v198_v47, 0.0  ;;  %v206_v49 = vmul.f32 %v198_v47, %v198_v47 }
 0x214   :  { %v200_v50 = vrot.slane %v199_v48, 4 }
 0x215   :  { %v207_v51 = vsel %vm58_vm0, %v206_v49, 0.0 }
 0x216   :  { %v201_v52 = vadd.f32 %v200_v50, %v199_v48  ;;  %v208_v53 = vrot.slane %v207_v51, 4 }
 0x218   :  { %v202_v54 = vrot.slane %v201_v52, 2  ;;  %v209_v55 = vadd.f32 %v208_v53, %v207_v51 }
 0x21a   :  { %v203_v56 = vadd.f32 %v202_v54, %v201_v52  ;;  %v210_v57 = vrot.slane %v209_v55, 2 }
 0x21c   :  { %v204_v58 = vrot.slane %v203_v56, 1  ;;  %v211_v59 = vadd.f32 %v210_v57, %v209_v55 }
 0x21e   :  { %v205_v60 = vadd.f32 %v204_v58, %v203_v56  ;;  %v212_v61 = vrot.slane %v211_v59, 1 }
 0x220   :  { %v213_v63 = vadd.f32 %v212_v61, %v211_v59  ;;  %v214_v0 = vmul.f32 0.125, %v205_v60 }
 0x222   :  { %v215_v3 = vmul.f32 0.125, %v213_v63  ;;  %v216_v4 = vmul.f32 %v214_v0, %v214_v0 }
 0x224   :  { %v217_v6 = vsub.f32 %v215_v3, %v216_v4 }
 0x226   :  { %v218_v7 = vmax.f32 %v217_v6, 0.0 }
 0x228   :  { %v219_v8 = vadd.f32 1e-05, %v218_v7 }
 0x22a   :  { %343 = vrsqrt.f32 %v219_v8  ;;  %vm226_vm8 = vweird.f32 %v219_v8 }
 0x230   :  { %v344_v9 = vpop.eup %343 }
 0x231   :  { %v221_v10 = vmul.f32 %v344_v9, %v219_v8  ;;  %vm227_vm7 = vweird.f32 %v344_v9 }
 0x232   :  { %vm228_vm9 = vmor %vm226_vm8, %vm227_vm7 }
 0x233   :  { %v222_v11 = vmul.f32 %v344_v9, %v221_v10 }
 0x235   :  { %v223_v12 = vmul.f32 0.5, %v222_v11 }
 0x237   :  { %v224_v13 = vsub.f32 1.5, %v223_v12 }
 0x239   :  { %v225_v15 = vmul.f32 %v344_v9, %v224_v13 }
 0x23b   :  { %v229_v17 = vsel %vm228_vm9, %v344_v9, %v225_v15 }
 0x23c   :  { %v230_v18 = vmul.f32 %v229_v17, %v172_v14 }
 0x23e   :  { %v233_v20 = vperm.slane %v230_v18, 0  ;;  %v231_v21 = vmul.f32 %v230_v18, %v214_v0 }
 0x240   :  { %v232_v22 = vsub.f32 %v173_v19, %v231_v21  ;;  %v234_v23 = vmul.f32 %v233_v20, %v198_v47 }
 0x242   :  { %v235_v24 = vperm.slane %v232_v22, 0 }
 0x244   :  { %v236_v25 = vadd.f32 %v235_v24, %v234_v23 }
 0x246   :  { %330 = vmatmul.msk.f32.vlgmr.msra.gmra.mxu3 %vm58_vm0, %v236_v25 }
 0x2c9   :  { %v263_v27 = vpop.f32.mrf.mxu3 }
 0x2ca   :  { %v264_v28 = vadd.f32 %v338_v26, %v263_v27 }
 0x2cc   :  { %v266_v29 = vmul.f32 %v264_v28, %v264_v28 }
 0x2ce   :  { %v268_v30 = vsel %vm267_vm10, %v266_v29, 0.0 }
 0x2cf   :  { %269 = vadd.xlane.f32.xlu0 %v268_v30 }
 0x342   :  { %v270_v31 = vpop.xlane.xlu0 %269 }
 0x343   :  { %345 = vrsqrt.f32 %v270_v31  ;;  %vm277_vm12 = vweird.f32 %v270_v31 }
 0x349   :  { %v346_v32 = vpop.eup %345 }
 0x34a   :  { %v272_v33 = vmul.f32 %v346_v32, %v270_v31  ;;  %vm278_vm11 = vweird.f32 %v346_v32 }
 0x34b   :  { %vm279_vm13 = vmor %vm277_vm12, %vm278_vm11 }
 0x34c   :  { %v273_v34 = vmul.f32 %v346_v32, %v272_v33 }
 0x34e   :  { %v274_v35 = vmul.f32 0.5, %v273_v34 }
 0x350   :  { %v275_v36 = vsub.f32 1.5, %v274_v35 }
 0x352   :  { %v276_v37 = vmul.f32 %v346_v32, %v275_v36 }
 0x354   :  { %v280_v38 = vsel %vm279_vm13, %v346_v32, %v276_v37 }
 0x355   :  { %v281_v39 = vmul.f32 %v280_v38, %v270_v31 }
 0x357   :  { %347 = vtanh.f32 %v281_v39 }
 0x358   :  { %349 = vtanh.f32 %v264_v28 }
 0x35d   :  { %v348_v40 = vpop.eup %347 }
 0x35e   :  { %v283_v42 = vmul.f32 %v348_v40, %v280_v38  ;;  %v350_v47 = vpop.eup %349 }
 0x35f   :  { %v288_v48 = vmul.f32 2.0, %v350_v47 }
 0x360   :  { %v285_v43 = vmul.f32 %v284_v41, %v283_v42 }
 0x361   :  { %v289_v49 = vmul.f32 1.442695, %v288_v48 }
 0x362   :  { %v286_v44 = vmul.f32 %v285_v43, %v264_v28 }
 0x363   :  { %351 = vpow2.f32 %v289_v49 }
 0x364   :  { %292 = vrot.lane.b32.xlu0 %v286_v44, %s353_s8  ;;  %310 = vst.msk [vmem:[%s525_s3] sm:$0xff] %vm267_vm10, %v286_v44 }
 0x369   :  { %v352_v50 = vpop.eup %351 }
 0x3d6   :  { %v293_v45 = vpop.permute.xlu0 %292 }
 0x3d7   :  { %v295_v46 = vsub.f32 %v428_v16, %v293_v45 }
 0x3d9   :  { %297 = vrot.lane.b32.xlu1 %v295_v46, %s354_s11 }
 0x44b   :  { %v298_v51 = vpop.permute.xlu1 %297 }
 0x44c   :  { %v300_v52 = vmul.f32 %v352_v50, %v298_v51 }
 0x44e   :  { %v301_v53 = vmul.f32 %v300_v52, %v298_v51 }
 0x450   :  { %303 = vrot.lane.b32.xlu1 %v301_v53, %s355_s2 }
 0x458   :  { %319 = vrot.lane.b32.xlu1 %v264_v28, %s356_s12 }
 0x4c2   :  { %v304_v54 = vpop.permute.xlu1 %303 }
 0x4c3   :  { %v306_v55 = vsel %vm267_vm10, %v304_v54, 0.0 }
 0x4c4   :  { %307 = vadd.xlane.f32.xlu2 %v306_v55 }
 0x4ca   :  { %v320_v59 = vpop.permute.xlu1 %319 }
 0x537   :  { %v308_v16 = vpop.xlane.xlu2 %307 }
 0x538   :  { %v309_v56 = vmul.f32 -0.5, %v308_v16 }
 0x53a   :  { %v311_v57 = vadd.f32 %v309_v56, %v264_v28 }
 0x53c   :  { %313 = vrot.lane.b32.xlu2 %v311_v57, %s355_s2 }
 0x596   :  { %v314_v58 = vpop.permute.xlu2 %313 }
 0x597   :  { %317 = vst.msk [vmem:[%s525_s3] sm:$0xff] %vm316_vm14, %v314_v58 }
 0x598   :  { %323 = vst.msk [vmem:[%s525_s3] sm:$0xff] %vm322_vm15, %v320_v59 }

</bundles_post_ra>
